<compile_context>
chip_gen: v7x
topology: tpu7x:2x2x1
jax: 0.10.0
libtpu: 0.0.40
codegen_flags: <defaults>
</compile_context>

<pallas_src>
import jax
import jax.numpy as jnp
from jax.experimental import pallas as pl
from jax.experimental.pallas import tpu as pltpu


def _round_up(x, m):
    return (x + m - 1) // m * m


def _pick_batch_tile(B, S, target_rows=256, max_rows=1024):
    """Pick a divisor of B: smallest one whose Bt*S reaches target_rows (fills the
    MXU M-dim / amortizes per-step overhead), capped so blocks stay VMEM-friendly."""
    divs = [d for d in range(1, B + 1) if B % d == 0]
    ok = [d for d in divs if d * S <= max_rows] or [1]
    hit = [d for d in ok if d * S >= target_rows]
    return hit[0] if hit else ok[-1]


def _attn_kernel(x_ref, wqkv_ref, bqkv_ref, wo_ref, bo_ref, o_ref):
    bt, s, ep = x_ref.shape
    # Flatten the batch tile: projection matmul gets M = bt*s rows.
    x = x_ref[...].reshape(bt * s, ep).astype(jnp.bfloat16)

    # Fused Q/K/V projection: one (bt*s, ep) x (ep, 3*ep) MXU matmul + one bias add.
    qkv = jnp.dot(x, wqkv_ref[...], preferred_element_type=jnp.float32)
    qkv = qkv + bqkv_ref[...]

    q = qkv[:, 0 * ep:1 * ep].reshape(bt, s, ep).astype(jnp.bfloat16)
    k = qkv[:, 1 * ep:2 * ep].reshape(bt, s, ep).astype(jnp.bfloat16)
    v = qkv[:, 2 * ep:3 * ep].reshape(bt, s, ep).astype(jnp.bfloat16)

    # Scores (bt, s, s): contract the shared last dim — no explicit k.T.
    # (1/sqrt(E) is already folded into the Q weights/bias.)
    scores = jnp.einsum("bqd,bkd->bqk", q, k,
                        preferred_element_type=jnp.float32)

    # Numerically stable softmax over the last axis.
    m = jnp.max(scores, axis=-1, keepdims=True)
    e = jnp.exp(scores - m)
    denom = jnp.sum(e, axis=-1, keepdims=True)
    attn = e * pl.reciprocal(denom, approx=True)

    # Dropout(p=0.1) on attention weights is identity in eval mode.
    ctx = jnp.einsum("bqk,bkd->bqd", attn.astype(jnp.bfloat16), v,
                     preferred_element_type=jnp.float32)

    # Final linear projection on the flattened slab.
    y = jnp.dot(ctx.reshape(bt * s, ep).astype(jnp.bfloat16), wo_ref[...],
                preferred_element_type=jnp.float32) + bo_ref[...]
    o_ref[...] = y.reshape(bt, s, ep).astype(o_ref.dtype)


def self_attention_single(x, params):
    """x: (B, S, E) float32.  params: dict of pre-transposed (E_in, E_out)
    weights and (1, E) biases (PyTorch nn.Linear: y = x @ W.T + b)."""
    B, S, E = x.shape
    Ep = _round_up(E, 128)          # lane-dense last dim
    scale = float(E) ** -0.5        # folded into the Q weights / bias below

    def pad_w(w):
        return jnp.zeros((Ep, Ep), w.dtype).at[:E, :E].set(w)

    def pad_b(b):
        return jnp.zeros((1, Ep), b.dtype).at[:, :E].set(b)

    # Fused, padded, pre-scaled parameters.  Weights cast to bf16 (MXU inputs,
    # half the DMA bytes); biases stay f32 and are added to the f32 accumulator.
    wqkv = jnp.concatenate(
        [pad_w(params["wq"] * scale), pad_w(params["wk"]), pad_w(params["wv"])],
        axis=1).astype(jnp.bfloat16)                          # (Ep, 3*Ep)
    bqkv = jnp.concatenate(
        [pad_b(params["bq"] * scale), pad_b(params["bk"]), pad_b(params["bv"])],
        axis=1)                                               # (1, 3*Ep) f32
    wo = pad_w(params["wo"]).astype(jnp.bfloat16)             # (Ep, Ep)
    bo = pad_b(params["bo"])                                  # (1, Ep) f32

    xp = x if Ep == E else jnp.pad(x, ((0, 0), (0, 0), (0, Ep - E)))

    Bt = _pick_batch_tile(B, S)
    grid = (B // Bt,)

    x_spec = pl.BlockSpec((Bt, S, Ep), lambda i: (i, 0, 0))
    # Weights / biases are grid-invariant (constant index_map -> DMA'd once).
    wqkv_spec = pl.BlockSpec((Ep, 3 * Ep), lambda i: (0, 0))
    bqkv_spec = pl.BlockSpec((1, 3 * Ep), lambda i: (0, 0))
    wo_spec = pl.BlockSpec((Ep, Ep), lambda i: (0, 0))
    bo_spec = pl.BlockSpec((1, Ep), lambda i: (0, 0))

    flops = B * (8 * S * Ep * Ep + 4 * S * S * Ep)
    transcendentals = B * S * S + B * S
    bytes_accessed = (2 * B * S * Ep * 4            # x in + out (f32)
                      + 4 * Ep * Ep * 2             # fused weights (bf16)
                      + 4 * Ep * 4)                 # biases (f32)

    out = pl.pallas_call(
        _attn_kernel,
        out_shape=jax.ShapeDtypeStruct((B, S, Ep), x.dtype),
        grid_spec=pltpu.PrefetchScalarGridSpec(
            num_scalar_prefetch=0,
            grid=grid,
            in_specs=[x_spec, wqkv_spec, bqkv_spec, wo_spec, bo_spec],
            out_specs=x_spec,
        ),
        compiler_params=pltpu.CompilerParams(
            dimension_semantics=("parallel",)),
        cost_estimate=pl.CostEstimate(
            flops=flops, transcendentals=transcendentals,
            bytes_accessed=bytes_accessed),
    )(xp, wqkv, bqkv, wo, bo)

    return out if Ep == E else out[..., :E]


def init_params(key, embed_dim):
    """Deterministic synthetic parameters (same shapes as the PyTorch module)."""
    keys = jax.random.split(key, 8)
    scale = 1.0 / jnp.sqrt(embed_dim)

    def lin(kw, kb):
        # stored already transposed: (E_in, E_out)
        w = jax.random.uniform(kw, (embed_dim, embed_dim), jnp.float32,
                               -scale, scale)
        b = jax.random.uniform(kb, (1, embed_dim), jnp.float32, -scale, scale)
        return w, b

    wq, bq = lin(keys[0], keys[1])
    wk, bk = lin(keys[2], keys[3])
    wv, bv = lin(keys[4], keys[5])
    wo, bo = lin(keys[6], keys[7])
    return dict(wq=wq, bq=bq, wk=wk, bk=bk, wv=wv, bv=bv, wo=wo, bo=bo)


def reference(x, p):
    """Pure-JAX f32 reference for correctness checking."""
    q = x @ p["wq"] + p["bq"]
    k = x @ p["wk"] + p["bk"]
    v = x @ p["wv"] + p["bv"]
    scores = jnp.einsum("bqe,bke->bqk", q, k) * (x.shape[-1] ** -0.5)
    attn = jax.nn.softmax(scores, axis=-1)
    out = jnp.einsum("bqk,bke->bqe", attn, v)
    return out @ p["wo"] + p["bo"]


if __name__ == "__main__":
    B, S, E = 2, 8, 32  # batch, seq, embed_dim
    key = jax.random.PRNGKey(0)
    kx, kp = jax.random.split(key)
    x = jax.random.normal(kx, (B, S, E), jnp.float32)
    params = init_params(kp, E)

    y = jax.block_until_ready(self_attention_single(x, params))
    y_ref = reference(x, params)

    assert y.shape == (B, S, E)
    # bf16 MXU inputs + approx reciprocal -> loosened tolerance vs the f32 reference.
    assert jnp.allclose(y, y_ref, atol=3e-2, rtol=3e-2), "mismatch vs reference"

    print("KERNEL_OK")
</pallas_src>

<mosaic_0001>
module attributes {stable_mosaic.version = 11 : i64} {
  func.func @_attn_kernel(%arg0: i32, %arg1: memref<2x8x128xf32, #tpu.memory_space<vmem>>, %arg2: memref<128x384xbf16, #tpu.memory_space<vmem>>, %arg3: memref<1x384xf32, #tpu.memory_space<vmem>>, %arg4: memref<128x128xbf16, #tpu.memory_space<vmem>>, %arg5: memref<1x128xf32, #tpu.memory_space<vmem>>, %arg6: memref<2x8x128xf32, #tpu.memory_space<vmem>>) attributes {dimension_semantics = [#tpu.dimension_semantics<parallel>], iteration_bounds = array<i64: 1>, scalar_prefetch = 0 : i64, scratch_operands = 0 : i64, tpu.core_type = #tpu.core_type<tc>, window_params = [{transform_indices = @transform_0, window_bounds = array<i64: 2, 8, 128>}, {pipeline_mode = #tpu.pipeline_mode<synchronous>, transform_indices = @transform_1, window_bounds = array<i64: 128, 384>}, {pipeline_mode = #tpu.pipeline_mode<synchronous>, transform_indices = @transform_2, window_bounds = array<i64: 1, 384>}, {pipeline_mode = #tpu.pipeline_mode<synchronous>, transform_indices = @transform_3, window_bounds = array<i64: 128, 128>}, {pipeline_mode = #tpu.pipeline_mode<synchronous>, transform_indices = @transform_4, window_bounds = array<i64: 1, 128>}, {transform_indices = @transform_5, window_bounds = array<i64: 2, 8, 128>}]} {
    %c0 = arith.constant 0 : index
    %c0_0 = arith.constant 0 : index
    %c0_1 = arith.constant 0 : index
    %0 = vector.load %arg1[%c0, %c0_0, %c0_1] : memref<2x8x128xf32, #tpu.memory_space<vmem>>, vector<2x8x128xf32>
    %1 = vector.shape_cast %0 : vector<2x8x128xf32> to vector<16x128xf32>
    %2 = arith.truncf %1 : vector<16x128xf32> to vector<16x128xbf16>
    %c0_2 = arith.constant 0 : index
    %c0_3 = arith.constant 0 : index
    %3 = vector.load %arg2[%c0_2, %c0_3] : memref<128x384xbf16, #tpu.memory_space<vmem>>, vector<128x384xbf16>
    %cst = arith.constant dense<0.000000e+00> : vector<16x384xf32>
    %4 = tpu.matmul %2, %3, %cst {dimension_numbers = #tpu.dot_dimension_numbers<[1], [0], [0], [1], [0, 0, 1, 1], [], []>} : vector<16x128xbf16>, vector<128x384xbf16>, vector<16x384xf32> -> vector<16x384xf32>
    %c0_4 = arith.constant 0 : index
    %c0_5 = arith.constant 0 : index
    %5 = vector.load %arg3[%c0_4, %c0_5] : memref<1x384xf32, #tpu.memory_space<vmem>>, vector<1x384xf32>
    %6 = vector.broadcast %5 : vector<1x384xf32> to vector<16x384xf32>
    %7 = arith.addf %4, %6 : vector<16x384xf32>
    %8 = vector.extract_strided_slice %7 {offsets = [0, 0], sizes = [16, 128], strides = [1, 1]} : vector<16x384xf32> to vector<16x128xf32>
    %9 = vector.shape_cast %8 : vector<16x128xf32> to vector<2x8x128xf32>
    %10 = arith.truncf %9 : vector<2x8x128xf32> to vector<2x8x128xbf16>
    %11 = vector.extract_strided_slice %7 {offsets = [0, 128], sizes = [16, 128], strides = [1, 1]} : vector<16x384xf32> to vector<16x128xf32>
    %12 = vector.shape_cast %11 : vector<16x128xf32> to vector<2x8x128xf32>
    %13 = arith.truncf %12 : vector<2x8x128xf32> to vector<2x8x128xbf16>
    %14 = vector.extract_strided_slice %7 {offsets = [0, 256], sizes = [16, 128], strides = [1, 1]} : vector<16x384xf32> to vector<16x128xf32>
    %15 = vector.shape_cast %14 : vector<16x128xf32> to vector<2x8x128xf32>
    %16 = arith.truncf %15 : vector<2x8x128xf32> to vector<2x8x128xbf16>
    "tpu.trace_start"() <{level = 10 : i32, message = "bqd,bkd->bqk"}> : () -> ()
    %cst_6 = arith.constant dense<0.000000e+00> : vector<2x8x8xf32>
    %17 = tpu.matmul %10, %13, %cst_6 {dimension_numbers = #tpu.dot_dimension_numbers<[2], [2], [1], [1], [0, 0, 0, 1, 1, 1], [0], [0]>} : vector<2x8x128xbf16>, vector<2x8x128xbf16>, vector<2x8x8xf32> -> vector<2x8x8xf32>
    "tpu.trace_stop"() : () -> ()
    %cst_7 = arith.constant dense<0xFF800000> : vector<2x8xf32>
    %18 = vector.multi_reduction <maximumf>, %17, %cst_7 [2] : vector<2x8x8xf32> to vector<2x8xf32>
    %19 = vector.shape_cast %18 : vector<2x8xf32> to vector<2x8x1xf32>
    %20 = vector.broadcast %19 : vector<2x8x1xf32> to vector<2x8x8xf32>
    %21 = arith.subf %17, %20 : vector<2x8x8xf32>
    %22 = math.exp %21 : vector<2x8x8xf32>
    %cst_8 = arith.constant dense<0.000000e+00> : vector<2x8xf32>
    %23 = vector.multi_reduction <add>, %22, %cst_8 [2] : vector<2x8x8xf32> to vector<2x8xf32>
    %24 = vector.shape_cast %23 : vector<2x8xf32> to vector<2x8x1xf32>
    %25 = tpu.reciprocal %24 {approx = true} : vector<2x8x1xf32> -> vector<2x8x1xf32>
    %26 = vector.broadcast %25 : vector<2x8x1xf32> to vector<2x8x8xf32>
    %27 = arith.mulf %22, %26 : vector<2x8x8xf32>
    %28 = arith.truncf %27 : vector<2x8x8xf32> to vector<2x8x8xbf16>
    "tpu.trace_start"() <{level = 10 : i32, message = "bqk,bkd->bqd"}> : () -> ()
    %cst_9 = arith.constant dense<0.000000e+00> : vector<2x8x128xf32>
    %29 = tpu.matmul %28, %16, %cst_9 {dimension_numbers = #tpu.dot_dimension_numbers<[2], [1], [1], [2], [0, 0, 0, 1, 1, 2], [0], [0]>} : vector<2x8x8xbf16>, vector<2x8x128xbf16>, vector<2x8x128xf32> -> vector<2x8x128xf32>
    "tpu.trace_stop"() : () -> ()
    %30 = vector.shape_cast %29 : vector<2x8x128xf32> to vector<16x128xf32>
    %31 = arith.truncf %30 : vector<16x128xf32> to vector<16x128xbf16>
    %c0_10 = arith.constant 0 : index
    %c0_11 = arith.constant 0 : index
    %32 = vector.load %arg4[%c0_10, %c0_11] : memref<128x128xbf16, #tpu.memory_space<vmem>>, vector<128x128xbf16>
    %cst_12 = arith.constant dense<0.000000e+00> : vector<16x128xf32>
    %33 = tpu.matmul %31, %32, %cst_12 {dimension_numbers = #tpu.dot_dimension_numbers<[1], [0], [0], [1], [0, 0, 1, 1], [], []>} : vector<16x128xbf16>, vector<128x128xbf16>, vector<16x128xf32> -> vector<16x128xf32>
    %c0_13 = arith.constant 0 : index
    %c0_14 = arith.constant 0 : index
    %34 = vector.load %arg5[%c0_13, %c0_14] : memref<1x128xf32, #tpu.memory_space<vmem>>, vector<1x128xf32>
    %35 = vector.broadcast %34 : vector<1x128xf32> to vector<16x128xf32>
    %36 = arith.addf %33, %35 : vector<16x128xf32>
    %37 = vector.shape_cast %36 : vector<16x128xf32> to vector<2x8x128xf32>
    %c0_15 = arith.constant 0 : index
    %c0_16 = arith.constant 0 : index
    %c0_17 = arith.constant 0 : index
    %38 = vector.load %arg6[%c0_15, %c0_16, %c0_17] : memref<2x8x128xf32, #tpu.memory_space<vmem>>, vector<2x8x128xf32>
    tpu.vector_store %arg6[%c0_15, %c0_16, %c0_17], %37 {strides = array<i32>} : memref<2x8x128xf32, #tpu.memory_space<vmem>>, vector<2x8x128xf32>,
    return
  }
  func.func @transform_0(%arg0: i32) -> (i32, i32, i32) {
    %c0_i32 = arith.constant 0 : i32
    %c0_i32_0 = arith.constant 0 : i32
    %c0_i32_1 = arith.constant 0 : i32
    return %arg0, %c0_i32, %c0_i32_0 : i32, i32, i32
  }
  func.func @transform_1(%arg0: i32) -> (i32, i32) {
    %c0_i32 = arith.constant 0 : i32
    %c0_i32_0 = arith.constant 0 : i32
    %c0_i32_1 = arith.constant 0 : i32
    return %c0_i32, %c0_i32_0 : i32, i32
  }
  func.func @transform_2(%arg0: i32) -> (i32, i32) {
    %c0_i32 = arith.constant 0 : i32
    %c0_i32_0 = arith.constant 0 : i32
    %c0_i32_1 = arith.constant 0 : i32
    return %c0_i32, %c0_i32_0 : i32, i32
  }
  func.func @transform_3(%arg0: i32) -> (i32, i32) {
    %c0_i32 = arith.constant 0 : i32
    %c0_i32_0 = arith.constant 0 : i32
    %c0_i32_1 = arith.constant 0 : i32
    return %c0_i32, %c0_i32_0 : i32, i32
  }
  func.func @transform_4(%arg0: i32) -> (i32, i32) {
    %c0_i32 = arith.constant 0 : i32
    %c0_i32_0 = arith.constant 0 : i32
    %c0_i32_1 = arith.constant 0 : i32
    return %c0_i32, %c0_i32_0 : i32, i32
  }
  func.func @transform_5(%arg0: i32) -> (i32, i32, i32) {
    %c0_i32 = arith.constant 0 : i32
    %c0_i32_0 = arith.constant 0 : i32
    %c0_i32_1 = arith.constant 0 : i32
    return %arg0, %c0_i32, %c0_i32_0 : i32, i32, i32
  }
}

</mosaic_0001>

<bundles_post_ra>
// kernel: tpu_custom_call.1
= control target key start
LH: loop header
LB: loop body
LE: loop exit
PB: predicated region body
PF: predicated region fallthrough
CT: control target
= control target key end

     0   :  { %10 = vsyncpa [#allocation3], 0  ;;  %s1085_s0 = inlined_call_operand.hbm [shape: f32[2,8,128], index: 0, kind: input, shape index: {}]   ;;  %s1086_s1 = inlined_call_operand.hbm [shape: bf16[128,384], index: 1, kind: input, shape index: {}]   ;;  %s1087_s2 = inlined_call_operand.vmem [shape: f32[1,384], index: 2, kind: input, shape index: {}]   ;;  %s1088_s3 = inlined_call_operand.hbm [shape: bf16[128,128], index: 3, kind: input, shape index: {}]   ;;  %s1089_s4 = inlined_call_operand.vmem [shape: f32[1,128], index: 4, kind: input, shape index: {}]   ;;  %s1090_s5 = inlined_call_operand.hbm [shape: f32[2,8,128], index: 5, kind: output, shape index: {}]  }
   0x1   :  { %11 = vsyncpa [#allocation6], 0 }
   0x2   :  { %12 = vsyncpa [#allocation4], 0  ;;  %s944_s18 = smov [#allocation5]   ;;  %s850_s22 = scalar_lea.hbm %s1086_s1, 3072 }
   0x3   :  { %s30_s19 = sshll.u32 %s944_s18, 4  ;;  %p851_p0 = scmp.ne.s32.totalorder %s1086_s1, %s850_s22  ;;  %s31_s19 = int_to_ptr.vmem [resolvable:$true] %s30_s19 }
   0x4   :  { %p854_p1 = scmp.lt.u32.totalorder %s850_s22, %s1086_s1 }
   0x6   :  { %p856_p2 = pnand %p854_p1, %p851_p0 }
   0x8   :  { %859 = shalt.err (!%p856_p2)
}
   0x9   :  { %s860_s27 = scalar_lea.vmem %s31_s19, 3072  ;;  %p865_p4 = scmp.lt.s32.totalorder %s31_s19, %s31_s19 }
   0xa   :  { %p861_p3 = scmp.ne.s32.totalorder %s31_s19, %s860_s27  ;;  %p866_p5 = scmp.lt.s32.totalorder %s860_s27, %s860_s27 }
   0xc   :  { %p867_p6 = por %p866_p5, %p865_p4 }
   0xe   :  { %p868_p7 = pnand %p867_p6, %p861_p3 }
  0x10   :  { %871 = shalt.err (!%p868_p7)
}
  0x11   :  { %s945_s28 = smov 192   ;;  %s946_s29 = smov 12  }
  0x12   :  { %36 = dma.hbm_to_vmem [thread:$0]  %s1086_s1, 3072, %s31_s19, [#allocation6], %s945_s28, %s945_s28, %s946_s29  }
  0x13   :  { %s947_s7 = smov [#allocation2]   ;;  %s872_s11 = scalar_lea.hbm %s1085_s0, 256 }
  0x14   :  { %s18_s8 = sshll.u32 %s947_s7, 4  ;;  %p873_p8 = scmp.ne.s32.totalorder %s1085_s0, %s872_s11  ;;  %s19_s8 = int_to_ptr.vmem [resolvable:$true] %s18_s8 }
  0x15   :  { %p876_p9 = scmp.lt.u32.totalorder %s872_s11, %s1085_s0 }
  0x17   :  { %p878_p10 = pnand %p876_p9, %p873_p8 }
  0x19   :  { %881 = shalt.err (!%p878_p10)
}
  0x1a   :  { %s882_s16 = scalar_lea.vmem %s19_s8, 256  ;;  %p887_p12 = scmp.lt.s32.totalorder %s19_s8, %s19_s8 }
  0x1b   :  { %p883_p11 = scmp.ne.s32.totalorder %s19_s8, %s882_s16  ;;  %p888_p13 = scmp.lt.s32.totalorder %s882_s16, %s882_s16 }
  0x1d   :  { %p889_p0 = por %p888_p13, %p887_p12 }
  0x1f   :  { %p890_p1 = pnand %p889_p0, %p883_p11 }
  0x21   :  { %893 = shalt.err (!%p890_p1)
}
  0x22   :  { %s948_s1 = smov 128   ;;  %s949_s17 = smov 8  }
  0x23   :  { %24 = dma.hbm_to_vmem [thread:$0]  %s1085_s0, 256, %s19_s8, [#allocation3], %s948_s1, %s948_s1, %s949_s17  }
  0x24   :  { %s950_s20 = smov [#allocation7]   ;;  %s894_s24 = scalar_lea.hbm %s1088_s3, 1024 }
  0x25   :  { %s44_s21 = sshll.u32 %s950_s20, 4  ;;  %p895_p2 = scmp.ne.s32.totalorder %s1088_s3, %s894_s24  ;;  %s45_s21 = int_to_ptr.vmem [resolvable:$true] %s44_s21 }
  0x26   :  { %p898_p3 = scmp.lt.u32.totalorder %s894_s24, %s1088_s3 }
  0x28   :  { %p900_p4 = pnand %p898_p3, %p895_p2 }
  0x2a   :  { %903 = shalt.err (!%p900_p4)
}
  0x2b   :  { %s904_s29 = scalar_lea.vmem %s45_s21, 1024  ;;  %p909_p6 = scmp.lt.s32.totalorder %s45_s21, %s45_s21 }
  0x2c   :  { %p905_p5 = scmp.ne.s32.totalorder %s45_s21, %s904_s29  ;;  %p910_p7 = scmp.lt.s32.totalorder %s904_s29, %s904_s29 }
  0x2e   :  { %p911_p8 = por %p910_p7, %p909_p6 }
  0x30   :  { %p912_p9 = pnand %p911_p8, %p905_p5 }
  0x32   :  { %915 = shalt.err (!%p912_p9)
}
  0x33   :  { %s951_s0 = smov 64   ;;  %s952_s30 = smov 4  }
  0x34   :  { %50 = dma.hbm_to_vmem [thread:$0]  %s1088_s3, 1024, %s45_s21, [#allocation6], %s951_s0, %s951_s0, %s952_s30  }
  0x35   :  { %938 = dma.done.wait [#allocation3], 256  }
  0x36   :  { %939 = vsyncadd [#allocation3], 4294967040 }
  0x37   :  { %940 = dma.done.wait [#allocation6], 4096  }
  0x38   :  { %941 = vsyncadd [#allocation6], 4294963200  ;;  %v953_v0 = vmov 0   ;;  %v954_v1 = vmov 0.0   ;;  %v802_v2 = vld [vmem:[#allocation5 + $0x4] ss:$12 sps:$4 sm:$0xff]   ;;  %v100_v29 = vlaneseq }
  0x39   :  { %275 = vmatprep.mubr.bf16.mxu0 %v953_v0  ;;  %725 = vmatprep.subr.bf16.mxu1 %v954_v1  ;;  %v804_v3 = vld [vmem:[#allocation5] ss:$12 sps:$4 sm:$0xff]   ;;  %v805_v4 = vld [vmem:[#allocation5 + $0x1c] ss:$12 sps:$4 sm:$0xff]   ;;  %v807_v5 = vld [vmem:[#allocation5 + $0x18] ss:$12 sps:$4 sm:$0xff]  }
  0x3a   :  { %243 = vmatprep.subr.bf16.mxu0 %v802_v2  ;;  %v808_v6 = vld [vmem:[#allocation5 + $0x34] ss:$12 sps:$4 sm:$0xff]   ;;  %v810_v7 = vld [vmem:[#allocation5 + $0x30] ss:$12 sps:$4 sm:$0xff]   ;;  %v811_v8 = vld [vmem:[#allocation5 + $0x4c] ss:$12 sps:$4 sm:$0xff]  }
  0x3b   :  { %244 = vmatpush1.bf16.msra.mxu0 %v804_v3  ;;  %v813_v9 = vld [vmem:[#allocation5 + $0x48] ss:$12 sps:$4 sm:$0xff]   ;;  %v814_v10 = vld [vmem:[#allocation5 + $0x64] ss:$12 sps:$4 sm:$0xff]   ;;  %v827_v12 = vld [vmem:[#allocation5 + $0x20] ss:$12 sps:$4 sm:$0xff]  }
  0x3c   :  { %245 = vmatprep.subr.bf16.mxu0 %v805_v4  ;;  %v826_v11 = vld [vmem:[#allocation5 + $0x8] ss:$12 sps:$4 sm:$0xff]   ;;  %v816_v13 = vld [vmem:[#allocation5 + $0x60] ss:$12 sps:$4 sm:$0xff]   ;;  %v828_v15 = vld [vmem:[#allocation5 + $0x38] ss:$12 sps:$4 sm:$0xff]  }
  0x3d   :  { %726 = vmatpush3.bf16.msra.mxu1 %v826_v11  ;;  %v817_v14 = vld [vmem:[#allocation5 + $0x7c] ss:$12 sps:$4 sm:$0xff]   ;;  %v819_v16 = vld [vmem:[#allocation5 + $0x78] ss:$12 sps:$4 sm:$0xff]   ;;  %v820_v17 = vld [vmem:[#allocation5 + $0x94] ss:$12 sps:$4 sm:$0xff]  }
  0x3e   :  { %727 = vmatprep.subr.bf16.mxu1 %v954_v1  ;;  %v829_v18 = vld [vmem:[#allocation5 + $0x50] ss:$12 sps:$4 sm:$0xff]   ;;  %v823_v20 = vld [vmem:[#allocation5 + $0xac] ss:$12 sps:$4 sm:$0xff]   ;;  %v830_v21 = vld [vmem:[#allocation5 + $0x68] ss:$12 sps:$4 sm:$0xff]  }
  0x3f   :  { %246 = vmatpush1.bf16.msra.mxu0 %v807_v5  ;;  %v822_v19 = vld [vmem:[#allocation5 + $0x90] ss:$12 sps:$4 sm:$0xff]   ;;  %v825_v22 = vld [vmem:[#allocation5 + $0xa8] ss:$12 sps:$4 sm:$0xff]   ;;  %v831_v26 = vld [vmem:[#allocation5 + $0x80] ss:$12 sps:$4 sm:$0xff]  }
  0x40   :  { %247 = vmatprep.subr.bf16.mxu0 %v808_v6  ;;  %v63_v23 = vld [vmem:[#allocation2] sm:$0xff]  ;;  %v64_v24 = vld [vmem:[#allocation2 + $0x8] sm:$0xff]  ;;  %vm955_vm0 = vmmov 0   ;;  %v101_v30 = vshrl.u32 %v100_v29, 7  ;;  %vm441_vm1 = vcmask 1043456   ;;  %vm413_vm2 = vcmask 64512  }
  0x41   :  { %728 = vmatpush3.bf16.msra.mxu1 %v827_v12  ;;  %v65_v25 = vpack.c.bf16 %v64_v24, %v63_v23  ;;  %v832_v27 = vld [vmem:[#allocation5 + $0x98] ss:$12 sps:$4 sm:$0xff]   ;;  %v833_v28 = vld [vmem:[#allocation5 + $0xb0] ss:$12 sps:$4 sm:$0xff]   ;;  %741 = vmatprep.mubr.msk.bf16.mxu1 %vm955_vm0, %v954_v1  ;;  %s956_s10 = smov [#allocation8]  }
  0x42   :  { %729 = vmatprep.subr.bf16.mxu1 %v954_v1  ;;  %v106_v31 = vsub.s32 1, %v101_v30  ;;  %v98_v32 = vld [vmem:[%s1087_s2] sm:$0x7]  ;;  %v102_v34 = vsub.s32 0, %v101_v30  ;;  %v110_v48 = vsub.s32 2, %v101_v30  ;;  %v839_v30 = vld [vmem:[#allocation7 + $0x28] sm:$0xff]  }
  0x43   :  { %248 = vmatpush1.bf16.msra.mxu0 %v810_v7  ;;  %s651_s11 = sshll.u32 %s956_s10, 4  ;;  %s652_s11 = int_to_ptr.vmem [resolvable:$true] %s651_s11 }
  0x44   :  { %249 = vmatprep.subr.bf16.mxu0 %v811_v8  ;;  %v107_v33 = vrot.slane %v98_v32, %v106_v31  ;;  %v103_v39 = vrot.slane %v98_v32, %v102_v34  ;;  %v111_v49 = vrot.slane %v98_v32, %v110_v48  ;;  %v840_v31 = vld [vmem:[#allocation7 + $0x30] sm:$0xff]   ;;  %v841_v32 = vld [vmem:[#allocation7 + $0x38] sm:$0xff]   ;;  %s916_s12 = scalar_lea.vmem %s652_s11, 256  ;;  %p921_p11 = scmp.lt.s32.totalorder %s652_s11, %s652_s11 }
  0x45   :  { %730 = vmatpush3.bf16.msra.mxu1 %v828_v15  ;;  %p917_p10 = scmp.ne.s32.totalorder %s652_s11, %s916_s12  ;;  %p922_p12 = scmp.lt.s32.totalorder %s916_s12, %s916_s12 }
  0x46   :  { %731 = vmatprep.subr.bf16.mxu1 %v954_v1 }
  0x47   :  { %250 = vmatpush1.bf16.msra.mxu0 %v813_v9  ;;  %p923_p13 = por %p922_p12, %p921_p11 }
  0x48   :  { %251 = vmatprep.subr.bf16.mxu0 %v814_v10 }
  0x49   :  { %732 = vmatpush3.bf16.msra.mxu1 %v829_v18  ;;  %v835_v18 = vld [vmem:[#allocation7 + $0x8] sm:$0xff]   ;;  %p924_p0 = pnand %p923_p13, %p917_p10 }
  0x4a   :  { %733 = vmatprep.subr.bf16.mxu1 %v954_v1 }
  0x4b   :  { %252 = vmatpush1.bf16.msra.mxu0 %v816_v13 }
  0x4c   :  { %253 = vmatprep.subr.bf16.mxu0 %v817_v14 }
  0x4d   :  { %734 = vmatpush3.bf16.msra.mxu1 %v830_v21  ;;  %v838_v21 = vld [vmem:[#allocation7 + $0x20] sm:$0xff]  }
  0x4e   :  { %735 = vmatprep.subr.bf16.mxu1 %v954_v1 }
  0x4f   :  { %254 = vmatpush1.bf16.msra.mxu0 %v819_v16 }
  0x50   :  { %255 = vmatprep.subr.bf16.mxu0 %v820_v17  ;;  %v834_v17 = vld [vmem:[#allocation7] sm:$0xff]  }
  0x51   :  { %736 = vmatpush3.bf16.msra.mxu1 %v831_v26 }
  0x52   :  { %737 = vmatprep.subr.bf16.mxu1 %v954_v1 }
  0x53   :  { %256 = vmatpush1.bf16.msra.mxu0 %v822_v19  ;;  %v836_v19 = vld [vmem:[#allocation7 + $0x10] sm:$0xff]  }
  0x54   :  { %257 = vmatprep.subr.bf16.mxu0 %v823_v20  ;;  %v837_v20 = vld [vmem:[#allocation7 + $0x18] sm:$0xff]  }
  0x55   :  { %738 = vmatpush3.bf16.msra.mxu1 %v832_v27 }
  0x56   :  { %739 = vmatprep.subr.bf16.mxu1 %v954_v1 }
  0x57   :  { %258 = vmatpush1.bf16.msra.mxu0 %v825_v22 }
  0x58   :  { %769 = vmatprep.subr.bf16.mxu0 %v954_v1 }
  0x59   :  { %740 = vmatpush3.bf16.msra.mxu1 %v833_v28 }
  0x5a   :  { %276 = vmatmul.mubr.bf16.vlgmr.msra.gmra.mrb[0].mxu0 %v65_v25  ;;  %745 = vmatprep.subr.bf16.mxu1 %v954_v1 }
  0x5b   :  { %785 = vmatprep.mubr.msk.bf16.mxu0 %vm955_vm0, %v954_v1  ;;  %770 = vmatpush3.bf16.msra.mxu0 %v834_v17 }
  0x5c   :  { %742 = vmatmul.mubr.bf16.vlgmr.msra.gmra.mrb[0].mxu1 %v65_v25  ;;  %771 = vmatprep.subr.bf16.mxu0 %v954_v1 }
  0x5d   :  { %747 = vmatprep.mubr.msk.bf16.mxu1 %vm955_vm0, %v954_v1 }
  0x5f   :  { %772 = vmatpush3.bf16.msra.mxu0 %v835_v18 }
  0x60   :  { %773 = vmatprep.subr.bf16.mxu0 %v954_v1 }
  0x63   :  { %774 = vmatpush3.bf16.msra.mxu0 %v836_v19 }
  0x64   :  { %775 = vmatprep.subr.bf16.mxu0 %v954_v1 }
  0x67   :  { %776 = vmatpush3.bf16.msra.mxu0 %v837_v20 }
  0x68   :  { %777 = vmatprep.subr.bf16.mxu0 %v954_v1 }
  0x6b   :  { %778 = vmatpush3.bf16.msra.mxu0 %v838_v21 }
  0x6c   :  { %779 = vmatprep.subr.bf16.mxu0 %v954_v1 }
  0x6f   :  { %780 = vmatpush3.bf16.msra.mxu0 %v839_v30 }
  0x70   :  { %781 = vmatprep.subr.bf16.mxu0 %v954_v1 }
  0x73   :  { %782 = vmatpush3.bf16.msra.mxu0 %v840_v31 }
  0x74   :  { %783 = vmatprep.subr.bf16.mxu0 %v954_v1 }
  0x77   :  { %784 = vmatpush3.bf16.msra.mxu0 %v841_v32 }
 0x12d   :  { %v277_v35 = vpop.f32.mrb[0].mxu0 }
 0x12e   :  { %v279_v36 = vpop.f32.mrb[1].mxu0  ;;  %v278_v42 = vadd.f32 %v277_v35, %v103_v39 }
 0x12f   :  { %v280_v37 = vadd.f32 %v279_v36, %v107_v33  ;;  %v281_v38 = vpop.f32.mrb[2].mxu0  ;;  %v320_v50 = vpop.f32.mrb[0].mxu1 }
 0x130   :  { %v283_v40 = vpop.f32.mrb[3].mxu0  ;;  %v327_v44 = vpack.c.bf16 %v278_v42, %v278_v42  ;;  %v282_v46 = vadd.f32 %v281_v38, %v103_v39  ;;  %v321_v51 = vadd.f32 %v320_v50, %v111_v49  ;;  %v743_v52 = vpop.f32.mrb[1].mxu1  ;;  %v690_v42 = vld [vmem:[%s1089_s4] ss:$0 sm:$0xff] }
 0x131   :  { %v329_v41 = vpack.c.bf16 %v280_v37, %v280_v37  ;;  %v284_v43 = vadd.f32 %v283_v40, %v107_v33  ;;  %v323_v53 = vpop.f32.mrb[2].mxu1 }
 0x132   :  { %v328_v47 = vpack.c.bf16 %v282_v46, %v282_v46  ;;  %v331_v54 = vpack.c.bf16 %v321_v51, %v321_v51  ;;  %v324_v55 = vadd.f32 %v323_v53, %v111_v49  ;;  %v744_v56 = vpop.f32.mrb[3].mxu1 }
 0x133   :  { %746 = vmatpush3.bf16.xpose.msra.mxu1 %v329_v41  ;;  %v330_v45 = vpack.c.bf16 %v284_v43, %v284_v43 }
 0x134   :  { %751 = vmatprep.subr.bf16.mxu1 %v954_v1  ;;  %v443_v57 = vsel %vm441_vm1, %v331_v54, 0  ;;  %v332_v58 = vpack.c.bf16 %v324_v55, %v324_v55 }
 0x136   :  { %v489_v59 = vsel %vm441_vm1, %v332_v58, 0 }
 0x13a   :  { %748 = vmatmul.mubr.bf16.vlgmr.msra.gmra.mrb[4].mxu1 %v327_v44 }
 0x13b   :  { %752 = vmatpush3.bf16.xpose.msra.mxu1 %v330_v45  ;;  %753 = vmatprep.mubr.msk.bf16.mxu1 %vm955_vm0, %v954_v1 }
 0x13c   :  { %757 = vmatprep.subr.bf16.mxu1 %v954_v1 }
 0x142   :  { %754 = vmatmul.mubr.bf16.vlgmr.msra.gmra.mrb[8].mxu1 %v328_v47 }
 0x143   :  { %759 = vmatprep.mubr.msk.bf16.mxu1 %vm955_vm0, %v954_v1  ;;  %758 = vmatpush3.bf16.msra.mxu1 %v443_v57 }
 0x144   :  { %763 = vmatprep.subr.bf16.mxu1 %v954_v1 }
 0x20d   :  { %v367_v60 = vpop.f32.mrb[4].mxu1 }
 0x20e   :  { %v749_v61 = vpop.f32.mrb[5].mxu1  ;;  %v414_v62 = vsel %vm413_vm2, %v367_v60, -inf }
 0x20f   :  { %415 = vmax.xlane.f32.xlu0 %v414_v62  ;;  %v370_v63 = vpop.f32.mrb[6].mxu1 }
 0x210   :  { %v750_v0 = vpop.f32.mrb[7].mxu1 }
 0x215   :  { %v407_v2 = vpop.f32.mrb[8].mxu1 }
 0x216   :  { %v755_v3 = vpop.f32.mrb[9].mxu1  ;;  %v417_v4 = vsel %vm413_vm2, %v407_v2, -inf }
 0x217   :  { %418 = vmax.xlane.f32.xlu0 %v417_v4  ;;  %v410_v5 = vpop.f32.mrb[10].mxu1 }
 0x218   :  { %v756_v6 = vpop.f32.mrb[11].mxu1 }
 0x29c   :  { %v416_v7 = vpop.xlane.xlu0 %415 }
 0x29d   :  { %v420_v8 = vsub.f32 %v367_v60, %v416_v7 }
 0x29f   :  { %v422_v9 = vmul.f32 1.442695, %v420_v8 }
 0x2a1   :  { %842 = vpow2.f32 %v422_v9 }
 0x2a4   :  { %v419_v10 = vpop.xlane.xlu0 %418 }
 0x2a5   :  { %v421_v11 = vsub.f32 %v407_v2, %v419_v10 }
 0x2a7   :  { %v424_v12 = vmul.f32 1.442695, %v421_v11 }
 0x2a9   :  { %844 = vpow2.f32 %v424_v12 }
 0x2ab   :  { %v843_v13 = vpop.eup %842 }
 0x2ac   :  { %v426_v14 = vsel %vm413_vm2, %v843_v13, 0.0 }
 0x2ad   :  { %427 = vadd.xlane.f32.xlu1 %v426_v14 }
 0x2b3   :  { %v845_v15 = vpop.eup %844 }
 0x2b4   :  { %v429_v16 = vsel %vm413_vm2, %v845_v15, 0.0 }
 0x2b5   :  { %430 = vadd.xlane.f32.xlu1 %v429_v16 }
 0x33a   :  { %v428_v22 = vpop.xlane.xlu1 %427 }
 0x33b   :  { %846 = vrcp.f32 %v428_v22 }
 0x342   :  { %v431_v23 = vpop.xlane.xlu1 %430 }
 0x343   :  { %848 = vrcp.f32 %v431_v23 }
 0x345   :  { %v847_v24 = vpop.eup %846 }
 0x346   :  { %v434_v25 = vmul.f32 %v847_v24, %v843_v13 }
 0x348   :  { %v436_v26 = vpack.c.bf16 %v434_v25, %v434_v25 }
 0x34a   :  { %760 = vmatmul.mubr.msk.bf16.vlgmr.msra.gmra.mrb[12].mxu1 %vm413_vm2, %v436_v26 }
 0x34b   :  { %764 = vmatpush3.bf16.msra.mxu1 %v489_v59  ;;  %765 = vmatprep.mubr.msk.bf16.mxu1 %vm955_vm0, %v954_v1 }
 0x34d   :  { %v849_v27 = vpop.eup %848 }
 0x34e   :  { %v435_v28 = vmul.f32 %v849_v27, %v845_v15 }
 0x350   :  { %v437_v29 = vpack.c.bf16 %v435_v28, %v435_v28 }
 0x352   :  { %766 = vmatmul.mubr.msk.bf16.vlgmr.msra.gmra.mrb[16].mxu1 %vm413_vm2, %v437_v29 }
 0x41d   :  { %v479_v33 = vpop.f32.mrb[12].mxu1 }
 0x41e   :  { %v761_v34 = vpop.f32.mrb[13].mxu1 }
 0x41f   :  { %v482_v35 = vpop.f32.mrb[14].mxu1 }
 0x420   :  { %v762_v36 = vpop.f32.mrb[15].mxu1 }
 0x425   :  { %v525_v37 = vpop.f32.mrb[16].mxu1 }
 0x426   :  { %v531_v38 = vpack.c.bf16 %v525_v37, %v479_v33  ;;  %v767_v39 = vpop.f32.mrb[17].mxu1 }
 0x427   :  { %v528_v40 = vpop.f32.mrb[18].mxu1 }
 0x428   :  { %v768_v41 = vpop.f32.mrb[19].mxu1  ;;  %786 = vmatmul.mubr.bf16.vlgmr.msra.gmra.mrb[4].mxu0 %v531_v38 }
 0x4fb   :  { %v637_v43 = vpop.f32.mrb[4].mxu0 }
 0x4fc   :  { %v638_v1 = vadd.f32 %v690_v42, %v637_v43  ;;  %v787_v44 = vpop.f32.mrb[5].mxu0 }
 0x4fd   :  { %v640_v45 = vpop.f32.mrb[6].mxu0 }
 0x4fe   :  { %644 = vst [vmem:[#allocation8] sm:$0xff] %v638_v1  ;;  %v641_v46 = vadd.f32 %v690_v42, %v640_v45  ;;  %v788_v47 = vpop.f32.mrb[7].mxu0 }
 0x500   :  { %645 = vst [vmem:[#allocation8 + $0x8] sm:$0xff] %v641_v46 }
 0x501   :  { %927 = shalt.err (!%p924_p0)
}
 0x502   :  { %s928_s14 = scalar_lea.hbm %s1090_s5, 256 }
 0x503   :  { %p929_p1 = scmp.ne.s32.totalorder %s1090_s5, %s928_s14  ;;  %p932_p2 = scmp.lt.u32.totalorder %s928_s14, %s1090_s5 }
 0x505   :  { %p934_p3 = pnand %p932_p2, %p929_p1 }
 0x507   :  { %937 = shalt.err (!%p934_p3)
}
 0x508   :  { %657 = dma.vmem_to_hbm [thread:$0]  %s652_s11, 256, %s1090_s5, [#allocation4], %s948_s1, %s948_s1, %s949_s17  }
 0x509   :  { %942 = dma.done.wait [#allocation4], 256  }
 0x50a   :  { %943 = vsyncadd [#allocation4], 4294967040 }
 0x50b   :  { %661 = vsyncpa [#allocation3], 1 }
 0x50c   :  { %662 = vsyncpa [#allocation6], 1 }
 0x50d   :  { %663 = vsyncpa [#allocation4], 1 }

</bundles_post_ra>
